<compile_context>
chip_gen: v7x
topology: tpu7x:2x2x1
jax: 0.10.0
libtpu: 0.0.40
codegen_flags: <defaults>
</compile_context>

<pallas_src>
import jax
import jax.numpy as jnp
from jax import lax
from jax.experimental import pallas as pl
from jax.experimental.pallas import tpu as pltpu


def _lr_kernel(x_ref, w_ref, b_ref, o_ref):
    # x: (TB, F), w: (2, F), b: (2, 1), o: (2, TB)  [lane-dense output]
    x = x_ref[...]
    w = w_ref[...]
    b = b_ref[...]
    # Contract the F dims of w and x on the MXU -> (2, TB), f32 accumulation.
    logits_t = lax.dot_general(
        w, x, (((1,), (1,)), ((), ())), preferred_element_type=jnp.float32)
    o_ref[...] = jax.nn.sigmoid(logits_t + b).astype(o_ref.dtype)


def _pick_batch_tile(batch, feat, x_budget_bytes=24 << 20, cap=8192):
    """Largest multiple-of-128 batch tile whose double-buffered f32 x
    footprint fits x_budget_bytes, capped at `cap` rows."""
    per_row = 2 * feat * 4                      # double-buffered f32 bytes/row
    tb = min(cap, max(128, (x_budget_bytes // per_row) // 128 * 128))
    if batch <= tb:
        # Single tile: block dims == array dims, always a legal BlockSpec.
        return batch
    return tb


def lr_forward(x, w, b, *, tb=None):
    """Logistic-regression forward.

    x: (B, F) f32
    w: (2, F) f32  -- natural nn.Linear weight layout
    b: (2, 1) f32  -- bias reshaped once at init time
    Returns (B, 2) f32, matching the PyTorch module.
    """
    B, F = x.shape
    TB = _pick_batch_tile(B, F) if tb is None else tb
    grid = (pl.cdiv(B, TB),)

    # VMEM budget: x double-buffer + (2, TB) out double-buffer + params + slack.
    needed = 2 * TB * F * 4 + 2 * 2 * TB * 4 + (F * 2 + 2) * 4
    vmem_limit = int(min(48 << 20, max(32 << 20, needed + (8 << 20))))

    out_t = pl.pallas_call(
        _lr_kernel,
        out_shape=jax.ShapeDtypeStruct((2, B), jnp.float32),
        grid_spec=pl.GridSpec(
            grid=grid,
            in_specs=[
                # x: streamed per batch tile (double-buffered by Pallas).
                pl.BlockSpec((TB, F), lambda i: (i, 0)),
                # weight / bias: constant index map -> VMEM-resident.
                pl.BlockSpec((2, F), lambda i: (0, 0)),
                pl.BlockSpec((2, 1), lambda i: (0, 0)),
            ],
            # Lane-dense output: last dim is the batch tile (multiple of 128
            # whenever tiled), so stores are unmasked vst.
            out_specs=pl.BlockSpec((2, TB), lambda i: (0, i)),
        ),
        compiler_params=pltpu.CompilerParams(
            dimension_semantics=("parallel",),
            vmem_limit_bytes=vmem_limit),
    )(x, w, b)

    # Transpose back to PyTorch's (B, 2); cheap (2 x B) XLA transpose.
    return out_t.T


# jit the wrapper so the whole forward (kernel + output transpose) is one dispatch.
lr_forward_jit = jax.jit(lr_forward, static_argnames=("tb",))


def init_lr_params(key, segment_length):
    """nn.Linear-style init (U[-1/sqrt(F), 1/sqrt(F)]) in kernel layout:
    weight (2, F), bias (2, 1). Done once, not per call."""
    in_features = segment_length * segment_length
    kw, kb = jax.random.split(key)
    bound = 1.0 / jnp.sqrt(jnp.float32(in_features))
    weight = jax.random.uniform(kw, (2, in_features), jnp.float32, -bound, bound)
    bias = jax.random.uniform(kb, (2,), jnp.float32, -bound, bound)
    return weight, bias.reshape(2, 1)


if __name__ == "__main__":
    segment_length = 16
    in_features = segment_length * segment_length   # 256
    batch = 8

    key = jax.random.PRNGKey(0)
    kx, kx2, kparams = jax.random.split(key, 3)

    w, b = init_lr_params(kparams, segment_length)          # (2, 256), (2, 1)

    # --- small single-tile case (block dims == array dims) ---
    x = jax.random.normal(kx, (batch, in_features), jnp.float32)
    out = jax.block_until_ready(lr_forward_jit(x, w, b))
    ref = jax.nn.sigmoid(x @ w.T + b.T)
    assert out.shape == (batch, 2)
    assert jnp.allclose(out, ref, atol=1e-5, rtol=1e-5)

    # --- multi-tile case with a padded tail (exercises the tiled path) ---
    x2 = jax.random.normal(kx2, (300, in_features), jnp.float32)
    out2 = jax.block_until_ready(lr_forward_jit(x2, w, b, tb=128))
    ref2 = jax.nn.sigmoid(x2 @ w.T + b.T)
    assert out2.shape == (300, 2)
    assert jnp.allclose(out2, ref2, atol=1e-5, rtol=1e-5)

    print("KERNEL_OK")
</pallas_src>

<mosaic_0001>
module attributes {stable_mosaic.version = 11 : i64} {
  func.func @_lr_kernel(%arg0: i32, %arg1: memref<8x256xf32, #tpu.memory_space<vmem>>, %arg2: memref<2x256xf32, #tpu.memory_space<vmem>>, %arg3: memref<2x1xf32, #tpu.memory_space<vmem>>, %arg4: memref<2x8xf32, #tpu.memory_space<vmem>>) attributes {dimension_semantics = [#tpu.dimension_semantics<parallel>], iteration_bounds = array<i64: 1>, scalar_prefetch = 0 : i64, scratch_operands = 0 : i64, tpu.core_type = #tpu.core_type<tc>, window_params = [{transform_indices = @transform_0, window_bounds = array<i64: 8, 256>}, {pipeline_mode = #tpu.pipeline_mode<synchronous>, transform_indices = @transform_1, window_bounds = array<i64: 2, 256>}, {pipeline_mode = #tpu.pipeline_mode<synchronous>, transform_indices = @transform_2, window_bounds = array<i64: 2, 1>}, {transform_indices = @transform_3, window_bounds = array<i64: 2, 8>}]} {
    %c0 = arith.constant 0 : index
    %c0_0 = arith.constant 0 : index
    %0 = vector.load %arg1[%c0, %c0_0] : memref<8x256xf32, #tpu.memory_space<vmem>>, vector<8x256xf32>
    %c0_1 = arith.constant 0 : index
    %c0_2 = arith.constant 0 : index
    %1 = vector.load %arg2[%c0_1, %c0_2] : memref<2x256xf32, #tpu.memory_space<vmem>>, vector<2x256xf32>
    %c0_3 = arith.constant 0 : index
    %c0_4 = arith.constant 0 : index
    %2 = vector.load %arg3[%c0_3, %c0_4] : memref<2x1xf32, #tpu.memory_space<vmem>>, vector<2x1xf32>
    %cst = arith.constant dense<0.000000e+00> : vector<2x8xf32>
    %3 = tpu.matmul %1, %0, %cst {dimension_numbers = #tpu.dot_dimension_numbers<[1], [1], [0], [0], [0, 0, 1, 0], [], []>} : vector<2x256xf32>, vector<8x256xf32>, vector<2x8xf32> -> vector<2x8xf32>
    %4 = vector.broadcast %2 : vector<2x1xf32> to vector<2x8xf32>
    %5 = arith.addf %3, %4 : vector<2x8xf32>
    %6 = arith.negf %5 : vector<2x8xf32>
    %7 = math.exp %6 : vector<2x8xf32>
    %cst_5 = arith.constant 1.000000e+00 : f32
    %8 = vector.broadcast %cst_5 : f32 to vector<2x8xf32>
    %9 = arith.addf %8, %7 : vector<2x8xf32>
    %10 = arith.divf %8, %9 : vector<2x8xf32>
    %c0_6 = arith.constant 0 : index
    %c0_7 = arith.constant 0 : index
    %11 = vector.load %arg4[%c0_6, %c0_7] : memref<2x8xf32, #tpu.memory_space<vmem>>, vector<2x8xf32>
    tpu.vector_store %arg4[%c0_6, %c0_7], %10 {strides = array<i32>} : memref<2x8xf32, #tpu.memory_space<vmem>>, vector<2x8xf32>,
    return
  }
  func.func @transform_0(%arg0: i32) -> (i32, i32) {
    %c0_i32 = arith.constant 0 : i32
    %c0_i32_0 = arith.constant 0 : i32
    return %arg0, %c0_i32 : i32, i32
  }
  func.func @transform_1(%arg0: i32) -> (i32, i32) {
    %c0_i32 = arith.constant 0 : i32
    %c0_i32_0 = arith.constant 0 : i32
    %c0_i32_1 = arith.constant 0 : i32
    return %c0_i32, %c0_i32_0 : i32, i32
  }
  func.func @transform_2(%arg0: i32) -> (i32, i32) {
    %c0_i32 = arith.constant 0 : i32
    %c0_i32_0 = arith.constant 0 : i32
    %c0_i32_1 = arith.constant 0 : i32
    return %c0_i32, %c0_i32_0 : i32, i32
  }
  func.func @transform_3(%arg0: i32) -> (i32, i32) {
    %c0_i32 = arith.constant 0 : i32
    %c0_i32_0 = arith.constant 0 : i32
    return %c0_i32, %arg0 : i32, i32
  }
}

</mosaic_0001>

<bundles_post_ra>
// kernel: lr_forward.1
= control target key start
LH: loop header
LB: loop body
LE: loop exit
PB: predicated region body
PF: predicated region fallthrough
CT: control target
= control target key end

     0   :  { %8 = vsyncpa [#allocation3], 0  ;;  %s251_s0 = inlined_call_operand.hbm [shape: f32[8,256], index: 0, kind: input, shape index: {}]   ;;  %s252_s1 = inlined_call_operand.vmem [shape: f32[2,256], index: 1, kind: input, shape index: {}]   ;;  %s253_s2 = inlined_call_operand.vmem [shape: f32[2,1], index: 2, kind: input, shape index: {}]   ;;  %s254_s3 = inlined_call_operand.hbm [shape: f32[2,8], index: 3, kind: output, shape index: {}]  }
   0x1   :  { %9 = vsyncpa [#allocation4], 0  ;;  %s198_s12 = smov [#allocation2]   ;;  %s150_s16 = scalar_lea.hbm %s251_s0, 256 }
   0x2   :  { %s16_s13 = sshll.u32 %s198_s12, 4  ;;  %p151_p0 = scmp.ne.s32.totalorder %s251_s0, %s150_s16  ;;  %s17_s13 = int_to_ptr.vmem [resolvable:$true] %s16_s13 }
   0x3   :  { %p154_p1 = scmp.lt.u32.totalorder %s150_s16, %s251_s0 }
   0x5   :  { %p156_p2 = pnand %p154_p1, %p151_p0 }
   0x7   :  { %159 = shalt.err (!%p156_p2)
}
   0x8   :  { %s160_s21 = scalar_lea.vmem %s17_s13, 256  ;;  %p165_p4 = scmp.lt.s32.totalorder %s17_s13, %s17_s13 }
   0x9   :  { %p161_p3 = scmp.ne.s32.totalorder %s17_s13, %s160_s21  ;;  %p166_p5 = scmp.lt.s32.totalorder %s160_s21, %s160_s21 }
   0xb   :  { %p167_p6 = por %p166_p5, %p165_p4 }
   0xd   :  { %p168_p7 = pnand %p167_p6, %p161_p3 }
   0xf   :  { %171 = shalt.err (!%p168_p7)
}
  0x10   :  { %19 = dma.hbm_to_vmem [thread:$0]  %s251_s0, 256, %s17_s13, [#allocation3]  }
  0x11   :  { %194 = dma.done.wait [#allocation3], 256  }
  0x12   :  { %195 = vsyncadd [#allocation3], 4294967040  ;;  %v199_v0 = vmov 0   ;;  %v28_v1 = vld [vmem:[#allocation2 + $0x8] sm:$0xff]  ;;  %v27_v2 = vld [vmem:[#allocation2] sm:$0xff]  ;;  %s200_s0 = smov [#allocation5]  }
  0x13   :  { %145 = vset.pattern.permute.xlu0 %v199_v0  ;;  %v140_v3 = vld.sshfl [vmem:[%s252_s1] sm:$0x33 pattern:$0x76325410]  ;;  %47 = vmatprep.subr.mxu0 %v28_v1  ;;  %s131_s1 = sshll.u32 %s200_s0, 4  ;;  %vm123_vm0 = vcmask 58368   ;;  %s132_s1 = int_to_ptr.vmem [resolvable:$true] %s131_s1 }
  0x14   :  { %v44_v4 = vcombine.high %v140_v3, %v140_v3  ;;  %v30_v5 = vld [vmem:[%s253_s2] sm:$0x3]  ;;  %48 = vmatpush1.xpose.msra.mxu0 %v27_v2  ;;  %s172_s2 = scalar_lea.vmem %s132_s1, 32  ;;  %p177_p9 = scmp.lt.s32.totalorder %s132_s1, %s132_s1 }
  0x15   :  { %33 = vperm.xlu0 %145, %v30_v5   ;;  %p173_p8 = scmp.ne.s32.totalorder %s132_s1, %s172_s2  ;;  %p178_p10 = scmp.lt.s32.totalorder %s172_s2, %s172_s2 }
  0x16   :  { %111 = vmatprep.mubr.f32.mxu0 %v44_v4 }
  0x17   :  { %112 = vmatmul.mubr.f32.vlgmr.msra.gmra.mrb[0].mxu0 %v140_v3  ;;  %p179_p11 = por %p178_p10, %p177_p9 }
  0x19   :  { %p180_p12 = pnand %p179_p11, %p173_p8 }
  0x94   :  { %v34_v6 = vpop.permute.xlu0 %33 }
  0xea   :  { %v113_v7 = vpop.f32.mrb[0].mxu0 }
  0xeb   :  { %v114_v8 = vadd.f32 %v113_v7, %v34_v6  ;;  %v115_v9 = vpop.f32.mrb[1].mxu0 }
  0xed   :  { %v141_v10 = vmul.f32 -1.442695, %v114_v8 }
  0xef   :  { %146 = vpow2.f32 %v141_v10 }
  0xf9   :  { %v147_v11 = vpop.eup %146 }
  0xfa   :  { %v120_v12 = vadd.f32 1.0, %v147_v11 }
  0xfc   :  { %148 = vrcp.f32 %v120_v12 }
 0x106   :  { %v149_v13 = vpop.eup %148 }
 0x107   :  { %124 = vst.msk [vmem:[#allocation5] sm:$0x3] %vm123_vm0, %v149_v13 }
 0x108   :  { %183 = shalt.err (!%p180_p12)
}
 0x109   :  { %s184_s30 = scalar_lea.hbm %s254_s3, 32 }
 0x10a   :  { %p185_p13 = scmp.ne.s32.totalorder %s254_s3, %s184_s30  ;;  %p188_p0 = scmp.lt.u32.totalorder %s184_s30, %s254_s3 }
 0x10c   :  { %p190_p1 = pnand %p188_p0, %p185_p13 }
 0x10e   :  { %193 = shalt.err (!%p190_p1)
}
 0x10f   :  { %134 = dma.vmem_to_hbm [thread:$0]  %s132_s1, 32, %s254_s3, [#allocation4]  }
 0x110   :  { %196 = dma.done.wait [#allocation4], 32  }
 0x111   :  { %197 = vsyncadd [#allocation4], 4294967264 }
 0x112   :  { %138 = vsyncpa [#allocation3], 1 }
 0x113   :  { %139 = vsyncpa [#allocation4], 1 }

</bundles_post_ra>
